<compile_context>
chip_gen: v6e
topology: v6e:2x2x1
jax: 0.10.0
libtpu: 0.0.40
codegen_flags: <defaults>
</compile_context>

<pallas_src>
import math
import functools

import jax
import jax.numpy as jnp
from jax.experimental import pallas as pl
from jax.experimental.pallas import tpu as pltpu


# ----------------------------- tuning helpers --------------------------------
def _vmem_limit_bytes():
    """~60% of physical VMEM: v5e/v6e (128 MiB) -> ~76 MiB, v7x (64 MiB) -> ~38 MiB."""
    cap = 128 * 1024 * 1024
    try:
        cap = int(pltpu.get_tpu_info().vmem_capacity_bytes)
    except Exception:
        pass
    return max(32 * 1024 * 1024, min(int(0.6 * cap), 100 * 1024 * 1024))


def _default_max_tile():
    """256-row tiles fill the 256-wide MXU on v6e/v7x; v5e's 4x128^2 MXU is
    saturated at 128 (and 256 would double VMEM per stream)."""
    try:
        info = pltpu.get_tpu_info()
        for attr in ("mxu_column_count", "mxu_size", "mxu_contracting_size"):
            val = getattr(info, attr, None)
            if val is not None and int(val) >= 256:
                return 256
        name = str(getattr(info, "chip_version", "")).lower()
        if any(tag in name for tag in ("v6", "v7", "6e", "7x")):
            return 256
    except Exception:
        pass
    return 128


def _pick_tile(S, requested, max_tile):
    if requested is not None:
        if S % requested != 0:
            raise ValueError(f"tile {requested} must divide sequence length {S}")
        return requested
    if S <= max_tile:
        return S
    for t in range(max_tile, 7, -8):
        if S % t == 0:
            return t
    # Refuse to silently fall back to a full-sequence tile (VMEM blow-up hazard,
    # especially on v7x's 64 MiB) -- ask the caller to pad S instead.
    raise ValueError(f"no tile size <= {max_tile} divides S={S}; pad the sequence")


# ----------------------------- Kernel 1: fused QKV projection ----------------
def _qkv_proj_kernel(h_ref, wqkv_ref, bqkv_ref, q_ref, k_ref, v_ref,
                     *, scale, num_heads, head_dim):
    E = num_heads * head_dim
    h = h_ref[...]                                          # (TS, E) bf16
    # Single fused matmul against the concatenated Wq|Wk|Wv weight.
    qkv = jnp.dot(h, wqkv_ref[...],
                  preferred_element_type=jnp.float32) + bqkv_ref[...]   # (TS, 3E) f32
    # Head-layout stores (static lane slices) -- no wrapper-side transpose and
    # no extra HBM round trip for the head split.  1/sqrt(d) folded into Q once.
    for hd in range(num_heads):
        lo = hd * head_dim
        q_ref[hd] = (qkv[:, lo:lo + head_dim] * scale).astype(q_ref.dtype)
        k_ref[hd] = qkv[:, E + lo:E + lo + head_dim].astype(k_ref.dtype)
        v_ref[hd] = qkv[:, 2 * E + lo:2 * E + lo + head_dim].astype(v_ref.dtype)


# ------------------- Kernel 2: attention + output proj + LayerNorm -----------
def _attn_output_kernel(q_ref, k_ref, v_ref, mask_ref, res_ref,
                        wo_ref, bo_ref, gamma_ref, beta_ref, out_ref,
                        *, ln_eps, num_heads, approx_recip, exp_in_bf16):
    q = q_ref[...]            # (H, TQ, d) bf16, pre-scaled by 1/sqrt(d)
    k = k_ref[...]            # (H, S,  d) bf16
    v = v_ref[...]            # (H, S,  d) bf16
    mask = mask_ref[...]      # (1, S)     f32 additive mask (broadcast over H, TQ)

    # scores[h, q, s] = sum_d q[h,q,d] * k[h,s,d]  -- single batched MXU matmul,
    # no per-head slices and no explicit k.T transpose.
    scores = jax.lax.dot_general(
        q, k, (((2,), (2,)), ((0,), (0,))),
        preferred_element_type=jnp.float32)                 # (H, TQ, S) f32
    scores = scores + mask

    m = jnp.max(scores, axis=-1, keepdims=True)
    x = scores - m
    if exp_in_bf16:
        # v6e/v7x only: bf16 EUP roughly doubles exp throughput. Not for v5e.
        p = jnp.exp(x.astype(jnp.bfloat16)).astype(jnp.float32)
    else:
        p = jnp.exp(x)
    denom = jnp.sum(p, axis=-1, keepdims=True)
    if approx_recip:
        # NOTE: approximate EUP reciprocal -> softmax rows do not sum exactly
        # to 1 (tiny relative bias); disable via approx_reciprocal=False for
        # accuracy-sensitive eval.
        p = p * pl.reciprocal(denom, approx=True)
    else:
        p = p / denom
    # TODO(synk): attention-prob dropout and head_mask are identity (eval mode).

    ctx = jax.lax.dot_general(
        p.astype(jnp.bfloat16), v, (((2,), (1,)), ((0,), (0,))),
        preferred_element_type=jnp.float32)                 # (H, TQ, d) f32

    # Accumulating output projection: concat_h(ctx_h) @ Wo == sum_h ctx_h @ Wo_h.
    # One (TQ, E) f32 accumulator stays live; no (H, TQ, E) slab, no sum over H.
    out = res_ref[...] + bo_ref[...]                        # residual + bias, f32
    for hd in range(num_heads):
        out = out + jnp.dot(ctx[hd].astype(jnp.bfloat16), wo_ref[hd],
                            preferred_element_type=jnp.float32)

    # LayerNorm (f32)
    mean = jnp.mean(out, axis=-1, keepdims=True)
    cent = out - mean
    var = jnp.mean(cent * cent, axis=-1, keepdims=True)
    normed = cent * jax.lax.rsqrt(var + ln_eps)
    out_ref[...] = (normed * gamma_ref[...] + beta_ref[...]).astype(out_ref.dtype)


# ----------------------------------- wrapper ----------------------------------
def bert_attention_pallas(hidden_states, attention_mask, params, num_heads,
                          ln_eps=1e-12, q_tile=None, s_tile=None,
                          approx_reciprocal=True, exp_in_bf16=False):
    """hidden_states: (B, S, E) f32, attention_mask: (B, 1, 1, S) additive f32."""
    B, S, E = hidden_states.shape
    H = num_heads
    d = E // H

    max_tile = _default_max_tile()
    TS = _pick_tile(S, s_tile, max_tile)
    TQ = _pick_tile(S, q_tile, max_tile)

    mask2d = attention_mask.reshape(B, S).astype(jnp.float32)
    h_bf16 = hidden_states.astype(jnp.bfloat16)

    # Fused QKV weight / bias; per-head slabs of Wo.  (Weights are stored
    # (in_features, out_features), i.e. already transposed vs nn.Linear.)
    wqkv = jnp.concatenate(
        [params["wq"], params["wk"], params["wv"]], axis=1).astype(jnp.bfloat16)   # (E, 3E)
    bqkv = jnp.concatenate(
        [params["bq"], params["bk"], params["bv"]]).reshape(1, 3 * E).astype(jnp.float32)
    wo_h = params["wo"].reshape(H, d, E).astype(jnp.bfloat16)

    def row(name):
        return params[name].reshape(1, E).astype(jnp.float32)

    cparams = pltpu.CompilerParams(
        dimension_semantics=("parallel", "parallel"),
        vmem_limit_bytes=_vmem_limit_bytes(),
    )

    single = pl.Buffered(1)   # single-buffer constant-index operands (no overlap benefit)

    # --- pallas_call 1: fused QKV projection, head-layout outputs ------------
    qkv_specs = [
        pl.BlockSpec((None, TS, E), lambda b, i: (b, i, 0)),                      # hidden tile
        pl.BlockSpec((E, 3 * E), lambda b, i: (0, 0), pipeline_mode=single),      # Wq|Wk|Wv
        pl.BlockSpec((1, 3 * E), lambda b, i: (0, 0), pipeline_mode=single),      # bq|bk|bv
    ]
    head_out_spec = lambda: pl.BlockSpec((None, H, TS, d), lambda b, i: (b, 0, i, 0))
    q4, k4, v4 = pl.pallas_call(
        functools.partial(_qkv_proj_kernel, scale=1.0 / math.sqrt(d),
                          num_heads=H, head_dim=d),
        out_shape=tuple(jax.ShapeDtypeStruct((B, H, S, d), jnp.bfloat16)
                        for _ in range(3)),
        grid=(B, S // TS),
        in_specs=qkv_specs,
        out_specs=(head_out_spec(), head_out_spec(), head_out_spec()),
        compiler_params=cparams,
    )(h_bf16, wqkv, bqkv)

    # --- pallas_call 2: attention + output dense + residual + LayerNorm ------
    # K/V are full-sequence resident; their block index changes only with the
    # batch axis (default double-buffering kept; single-buffer on v7x if VMEM-tight).
    out = pl.pallas_call(
        functools.partial(_attn_output_kernel, ln_eps=ln_eps, num_heads=H,
                          approx_recip=approx_reciprocal, exp_in_bf16=exp_in_bf16),
        out_shape=jax.ShapeDtypeStruct((B, S, E), hidden_states.dtype),
        grid=(B, S // TQ),
        in_specs=[
            pl.BlockSpec((None, H, TQ, d), lambda b, i: (b, 0, i, 0)),            # Q tile
            pl.BlockSpec((None, H, S, d), lambda b, i: (b, 0, 0, 0)),             # K full seq
            pl.BlockSpec((None, H, S, d), lambda b, i: (b, 0, 0, 0)),             # V full seq
            pl.BlockSpec((1, S), lambda b, i: (b, 0), pipeline_mode=single),      # additive mask
            pl.BlockSpec((None, TQ, E), lambda b, i: (b, i, 0)),                  # residual (f32)
            pl.BlockSpec((H, d, E), lambda b, i: (0, 0, 0), pipeline_mode=single),  # Wo per head
            pl.BlockSpec((1, E), lambda b, i: (0, 0), pipeline_mode=single),      # bo
            pl.BlockSpec((1, E), lambda b, i: (0, 0), pipeline_mode=single),      # gamma
            pl.BlockSpec((1, E), lambda b, i: (0, 0), pipeline_mode=single),      # beta
        ],
        out_specs=pl.BlockSpec((None, TQ, E), lambda b, i: (b, i, 0)),
        compiler_params=cparams,
    )(q4, k4, v4, mask2d, hidden_states,
      wo_h, row("bo"), row("gamma"), row("beta"))
    return out


# --------------------------------- reference ----------------------------------
def bert_attention_ref(hidden_states, attention_mask, params, num_heads, ln_eps=1e-12):
    """Pure-JAX f32 reference mirroring the PyTorch forward (eval, no history)."""
    B, S, E = hidden_states.shape
    d = E // num_heads

    def linear(x, w, b):
        return jnp.einsum("bse,ef->bsf", x, w) + b

    q = linear(hidden_states, params["wq"], params["bq"])
    k = linear(hidden_states, params["wk"], params["bk"])
    v = linear(hidden_states, params["wv"], params["bv"])

    def split(x):  # (B,S,E) -> (B,H,S,d)
        return x.reshape(B, S, num_heads, d).transpose(0, 2, 1, 3)

    q, k, v = split(q), split(k), split(v)
    scores = jnp.einsum("bhsd,bhtd->bhst", q, k) / math.sqrt(d)
    scores = scores + attention_mask
    probs = jax.nn.softmax(scores, axis=-1)
    ctx = jnp.einsum("bhst,bhtd->bhsd", probs, v)
    ctx = ctx.transpose(0, 2, 1, 3).reshape(B, S, E)

    out = linear(ctx, params["wo"], params["bo"]) + hidden_states
    mean = jnp.mean(out, axis=-1, keepdims=True)
    var = jnp.mean((out - mean) ** 2, axis=-1, keepdims=True)
    out = (out - mean) / jnp.sqrt(var + ln_eps)
    return out * params["gamma"] + params["beta"]


def init_params(key, hidden_size):
    ks = jax.random.split(key, 8)
    scale = 0.02
    E = hidden_size
    # Weights stored already transposed (in_features, out_features) so kernels
    # compute x @ W; equivalent to nn.Linear's x @ weight.T.
    return {
        "wq": scale * jax.random.normal(ks[0], (E, E), jnp.float32),
        "bq": scale * jax.random.normal(ks[1], (E,), jnp.float32),
        "wk": scale * jax.random.normal(ks[2], (E, E), jnp.float32),
        "bk": scale * jax.random.normal(ks[3], (E,), jnp.float32),
        "wv": scale * jax.random.normal(ks[4], (E, E), jnp.float32),
        "bv": scale * jax.random.normal(ks[5], (E,), jnp.float32),
        "wo": scale * jax.random.normal(ks[6], (E, E), jnp.float32),
        "bo": scale * jax.random.normal(ks[7], (E,), jnp.float32),
        "gamma": jnp.ones((E,), jnp.float32),
        "beta": jnp.zeros((E,), jnp.float32),
    }


if __name__ == "__main__":
    # Small demo shapes; q_tile/s_tile = 16 so the (batch, seq-tile) grids have
    # multiple steps and the query-tiling path is actually exercised.
    B, S, E, H = 2, 32, 32, 4   # batch, seq, hidden, num_attention_heads

    key = jax.random.PRNGKey(0)
    k_h, k_m, k_p = jax.random.split(key, 3)

    hidden_states = jax.random.normal(k_h, (B, S, E), jnp.float32)

    # Additive BERT-style mask: 0 for visible tokens, -10000 for padded ones.
    keep = (jax.random.uniform(k_m, (B, S)) > 0.2).astype(jnp.float32)
    keep = keep.at[:, 0].set(1.0)  # ensure at least one visible key per row
    attention_mask = ((1.0 - keep) * -10000.0).reshape(B, 1, 1, S)

    params = init_params(k_p, E)

    out = bert_attention_pallas(hidden_states, attention_mask, params,
                                num_heads=H, q_tile=16, s_tile=16)
    out = jax.block_until_ready(out)

    ref = bert_attention_ref(hidden_states, attention_mask, params, num_heads=H)
    assert out.shape == (B, S, E)
    # bf16 MXU operands with f32 accumulation (+ approx EUP reciprocal in the
    # softmax) -> relaxed tolerance vs the f32 reference.
    assert jnp.allclose(out, ref, rtol=2e-2, atol=2e-2), "mismatch vs reference"

    print("KERNEL_OK")
</pallas_src>

<mosaic_0001>
module attributes {stable_mosaic.version = 11 : i64} {
  func.func @_qkv_proj_kernel(%arg0: i32, %arg1: i32, %arg2: memref<1x16x32xbf16, #tpu.memory_space<vmem>>, %arg3: memref<32x96xbf16, #tpu.memory_space<vmem>>, %arg4: memref<1x96xf32, #tpu.memory_space<vmem>>, %arg5: memref<1x4x16x8xbf16, #tpu.memory_space<vmem>>, %arg6: memref<1x4x16x8xbf16, #tpu.memory_space<vmem>>, %arg7: memref<1x4x16x8xbf16, #tpu.memory_space<vmem>>) attributes {dimension_semantics = [#tpu.dimension_semantics<parallel>, #tpu.dimension_semantics<parallel>], iteration_bounds = array<i64: 2, 2>, scalar_prefetch = 0 : i64, scratch_operands = 0 : i64, tpu.core_type = #tpu.core_type<tc>, window_params = [{transform_indices = @transform_0, window_bounds = array<i64: 1, 16, 32>}, {pipeline_mode = #tpu.pipeline_mode<synchronous>, transform_indices = @transform_1, window_bounds = array<i64: 32, 96>}, {pipeline_mode = #tpu.pipeline_mode<synchronous>, transform_indices = @transform_2, window_bounds = array<i64: 1, 96>}, {transform_indices = @transform_3, window_bounds = array<i64: 1, 4, 16, 8>}, {transform_indices = @transform_4, window_bounds = array<i64: 1, 4, 16, 8>}, {transform_indices = @transform_5, window_bounds = array<i64: 1, 4, 16, 8>}]} {
    %c0 = arith.constant 0 : index
    %c0_0 = arith.constant 0 : index
    %c0_1 = arith.constant 0 : index
    %0 = vector.load %arg2[%c0, %c0_0, %c0_1] : memref<1x16x32xbf16, #tpu.memory_space<vmem>>, vector<1x16x32xbf16>
    %1 = vector.shape_cast %0 : vector<1x16x32xbf16> to vector<16x32xbf16>
    %c0_2 = arith.constant 0 : index
    %c0_3 = arith.constant 0 : index
    %2 = vector.load %arg3[%c0_2, %c0_3] : memref<32x96xbf16, #tpu.memory_space<vmem>>, vector<32x96xbf16>
    %cst = arith.constant dense<0.000000e+00> : vector<16x96xf32>
    %3 = tpu.matmul %1, %2, %cst {dimension_numbers = #tpu.dot_dimension_numbers<[1], [0], [0], [1], [0, 0, 1, 1], [], []>} : vector<16x32xbf16>, vector<32x96xbf16>, vector<16x96xf32> -> vector<16x96xf32>
    %c0_4 = arith.constant 0 : index
    %c0_5 = arith.constant 0 : index
    %4 = vector.load %arg4[%c0_4, %c0_5] : memref<1x96xf32, #tpu.memory_space<vmem>>, vector<1x96xf32>
    %5 = vector.broadcast %4 : vector<1x96xf32> to vector<16x96xf32>
    %6 = arith.addf %3, %5 : vector<16x96xf32>
    %7 = vector.extract_strided_slice %6 {offsets = [0, 0], sizes = [16, 8], strides = [1, 1]} : vector<16x96xf32> to vector<16x8xf32>
    %cst_6 = arith.constant 0.353553385 : f32
    %8 = vector.broadcast %cst_6 : f32 to vector<16x8xf32>
    %9 = arith.mulf %7, %8 : vector<16x8xf32>
    %10 = arith.truncf %9 : vector<16x8xf32> to vector<16x8xbf16>
    %c0_7 = arith.constant 0 : index
    %c0_8 = arith.constant 0 : index
    %c0_9 = arith.constant 0 : index
    %c0_10 = arith.constant 0 : index
    %11 = vector.load %arg5[%c0_7, %c0_8, %c0_9, %c0_10] : memref<1x4x16x8xbf16, #tpu.memory_space<vmem>>, vector<1x1x16x8xbf16>
    %12 = vector.shape_cast %11 : vector<1x1x16x8xbf16> to vector<16x8xbf16>
    %13 = vector.shape_cast %10 : vector<16x8xbf16> to vector<1x1x16x8xbf16>
    tpu.vector_store %arg5[%c0_7, %c0_8, %c0_9, %c0_10], %13 {strides = array<i32>} : memref<1x4x16x8xbf16, #tpu.memory_space<vmem>>, vector<1x1x16x8xbf16>,
    %14 = vector.extract_strided_slice %6 {offsets = [0, 32], sizes = [16, 8], strides = [1, 1]} : vector<16x96xf32> to vector<16x8xf32>
    %15 = arith.truncf %14 : vector<16x8xf32> to vector<16x8xbf16>
    %c0_11 = arith.constant 0 : index
    %c0_12 = arith.constant 0 : index
    %c0_13 = arith.constant 0 : index
    %c0_14 = arith.constant 0 : index
    %16 = vector.load %arg6[%c0_11, %c0_12, %c0_13, %c0_14] : memref<1x4x16x8xbf16, #tpu.memory_space<vmem>>, vector<1x1x16x8xbf16>
    %17 = vector.shape_cast %16 : vector<1x1x16x8xbf16> to vector<16x8xbf16>
    %18 = vector.shape_cast %15 : vector<16x8xbf16> to vector<1x1x16x8xbf16>
    tpu.vector_store %arg6[%c0_11, %c0_12, %c0_13, %c0_14], %18 {strides = array<i32>} : memref<1x4x16x8xbf16, #tpu.memory_space<vmem>>, vector<1x1x16x8xbf16>,
    %19 = vector.extract_strided_slice %6 {offsets = [0, 64], sizes = [16, 8], strides = [1, 1]} : vector<16x96xf32> to vector<16x8xf32>
    %20 = arith.truncf %19 : vector<16x8xf32> to vector<16x8xbf16>
    %c0_15 = arith.constant 0 : index
    %c0_16 = arith.constant 0 : index
    %c0_17 = arith.constant 0 : index
    %c0_18 = arith.constant 0 : index
    %21 = vector.load %arg7[%c0_15, %c0_16, %c0_17, %c0_18] : memref<1x4x16x8xbf16, #tpu.memory_space<vmem>>, vector<1x1x16x8xbf16>
    %22 = vector.shape_cast %21 : vector<1x1x16x8xbf16> to vector<16x8xbf16>
    %23 = vector.shape_cast %20 : vector<16x8xbf16> to vector<1x1x16x8xbf16>
    tpu.vector_store %arg7[%c0_15, %c0_16, %c0_17, %c0_18], %23 {strides = array<i32>} : memref<1x4x16x8xbf16, #tpu.memory_space<vmem>>, vector<1x1x16x8xbf16>,
    %24 = vector.extract_strided_slice %6 {offsets = [0, 8], sizes = [16, 8], strides = [1, 1]} : vector<16x96xf32> to vector<16x8xf32>
    %cst_19 = arith.constant 0.353553385 : f32
    %25 = vector.broadcast %cst_19 : f32 to vector<16x8xf32>
    %26 = arith.mulf %24, %25 : vector<16x8xf32>
    %27 = arith.truncf %26 : vector<16x8xf32> to vector<16x8xbf16>
    %c0_20 = arith.constant 0 : index
    %c1 = arith.constant 1 : index
    %c0_21 = arith.constant 0 : index
    %c0_22 = arith.constant 0 : index
    %28 = vector.load %arg5[%c0_20, %c1, %c0_21, %c0_22] : memref<1x4x16x8xbf16, #tpu.memory_space<vmem>>, vector<1x1x16x8xbf16>
    %29 = vector.shape_cast %28 : vector<1x1x16x8xbf16> to vector<16x8xbf16>
    %30 = vector.shape_cast %27 : vector<16x8xbf16> to vector<1x1x16x8xbf16>
    tpu.vector_store %arg5[%c0_20, %c1, %c0_21, %c0_22], %30 {strides = array<i32>} : memref<1x4x16x8xbf16, #tpu.memory_space<vmem>>, vector<1x1x16x8xbf16>,
    %31 = vector.extract_strided_slice %6 {offsets = [0, 40], sizes = [16, 8], strides = [1, 1]} : vector<16x96xf32> to vector<16x8xf32>
    %32 = arith.truncf %31 : vector<16x8xf32> to vector<16x8xbf16>
    %c0_23 = arith.constant 0 : index
    %c1_24 = arith.constant 1 : index
    %c0_25 = arith.constant 0 : index
    %c0_26 = arith.constant 0 : index
    %33 = vector.load %arg6[%c0_23, %c1_24, %c0_25, %c0_26] : memref<1x4x16x8xbf16, #tpu.memory_space<vmem>>, vector<1x1x16x8xbf16>
    %34 = vector.shape_cast %33 : vector<1x1x16x8xbf16> to vector<16x8xbf16>
    %35 = vector.shape_cast %32 : vector<16x8xbf16> to vector<1x1x16x8xbf16>
    tpu.vector_store %arg6[%c0_23, %c1_24, %c0_25, %c0_26], %35 {strides = array<i32>} : memref<1x4x16x8xbf16, #tpu.memory_space<vmem>>, vector<1x1x16x8xbf16>,
    %36 = vector.extract_strided_slice %6 {offsets = [0, 72], sizes = [16, 8], strides = [1, 1]} : vector<16x96xf32> to vector<16x8xf32>
    %37 = arith.truncf %36 : vector<16x8xf32> to vector<16x8xbf16>
    %c0_27 = arith.constant 0 : index
    %c1_28 = arith.constant 1 : index
    %c0_29 = arith.constant 0 : index
    %c0_30 = arith.constant 0 : index
    %38 = vector.load %arg7[%c0_27, %c1_28, %c0_29, %c0_30] : memref<1x4x16x8xbf16, #tpu.memory_space<vmem>>, vector<1x1x16x8xbf16>
    %39 = vector.shape_cast %38 : vector<1x1x16x8xbf16> to vector<16x8xbf16>
    %40 = vector.shape_cast %37 : vector<16x8xbf16> to vector<1x1x16x8xbf16>
    tpu.vector_store %arg7[%c0_27, %c1_28, %c0_29, %c0_30], %40 {strides = array<i32>} : memref<1x4x16x8xbf16, #tpu.memory_space<vmem>>, vector<1x1x16x8xbf16>,
    %41 = vector.extract_strided_slice %6 {offsets = [0, 16], sizes = [16, 8], strides = [1, 1]} : vector<16x96xf32> to vector<16x8xf32>
    %cst_31 = arith.constant 0.353553385 : f32
    %42 = vector.broadcast %cst_31 : f32 to vector<16x8xf32>
    %43 = arith.mulf %41, %42 : vector<16x8xf32>
    %44 = arith.truncf %43 : vector<16x8xf32> to vector<16x8xbf16>
    %c0_32 = arith.constant 0 : index
    %c2 = arith.constant 2 : index
    %c0_33 = arith.constant 0 : index
    %c0_34 = arith.constant 0 : index
    %45 = vector.load %arg5[%c0_32, %c2, %c0_33, %c0_34] : memref<1x4x16x8xbf16, #tpu.memory_space<vmem>>, vector<1x1x16x8xbf16>
    %46 = vector.shape_cast %45 : vector<1x1x16x8xbf16> to vector<16x8xbf16>
    %47 = vector.shape_cast %44 : vector<16x8xbf16> to vector<1x1x16x8xbf16>
    tpu.vector_store %arg5[%c0_32, %c2, %c0_33, %c0_34], %47 {strides = array<i32>} : memref<1x4x16x8xbf16, #tpu.memory_space<vmem>>, vector<1x1x16x8xbf16>,
    %48 = vector.extract_strided_slice %6 {offsets = [0, 48], sizes = [16, 8], strides = [1, 1]} : vector<16x96xf32> to vector<16x8xf32>
    %49 = arith.truncf %48 : vector<16x8xf32> to vector<16x8xbf16>
    %c0_35 = arith.constant 0 : index
    %c2_36 = arith.constant 2 : index
    %c0_37 = arith.constant 0 : index
    %c0_38 = arith.constant 0 : index
    %50 = vector.load %arg6[%c0_35, %c2_36, %c0_37, %c0_38] : memref<1x4x16x8xbf16, #tpu.memory_space<vmem>>, vector<1x1x16x8xbf16>
    %51 = vector.shape_cast %50 : vector<1x1x16x8xbf16> to vector<16x8xbf16>
    %52 = vector.shape_cast %49 : vector<16x8xbf16> to vector<1x1x16x8xbf16>
    tpu.vector_store %arg6[%c0_35, %c2_36, %c0_37, %c0_38], %52 {strides = array<i32>} : memref<1x4x16x8xbf16, #tpu.memory_space<vmem>>, vector<1x1x16x8xbf16>,
    %53 = vector.extract_strided_slice %6 {offsets = [0, 80], sizes = [16, 8], strides = [1, 1]} : vector<16x96xf32> to vector<16x8xf32>
    %54 = arith.truncf %53 : vector<16x8xf32> to vector<16x8xbf16>
    %c0_39 = arith.constant 0 : index
    %c2_40 = arith.constant 2 : index
    %c0_41 = arith.constant 0 : index
    %c0_42 = arith.constant 0 : index
    %55 = vector.load %arg7[%c0_39, %c2_40, %c0_41, %c0_42] : memref<1x4x16x8xbf16, #tpu.memory_space<vmem>>, vector<1x1x16x8xbf16>
    %56 = vector.shape_cast %55 : vector<1x1x16x8xbf16> to vector<16x8xbf16>
    %57 = vector.shape_cast %54 : vector<16x8xbf16> to vector<1x1x16x8xbf16>
    tpu.vector_store %arg7[%c0_39, %c2_40, %c0_41, %c0_42], %57 {strides = array<i32>} : memref<1x4x16x8xbf16, #tpu.memory_space<vmem>>, vector<1x1x16x8xbf16>,
    %58 = vector.extract_strided_slice %6 {offsets = [0, 24], sizes = [16, 8], strides = [1, 1]} : vector<16x96xf32> to vector<16x8xf32>
    %cst_43 = arith.constant 0.353553385 : f32
    %59 = vector.broadcast %cst_43 : f32 to vector<16x8xf32>
    %60 = arith.mulf %58, %59 : vector<16x8xf32>
    %61 = arith.truncf %60 : vector<16x8xf32> to vector<16x8xbf16>
    %c0_44 = arith.constant 0 : index
    %c3 = arith.constant 3 : index
    %c0_45 = arith.constant 0 : index
    %c0_46 = arith.constant 0 : index
    %62 = vector.load %arg5[%c0_44, %c3, %c0_45, %c0_46] : memref<1x4x16x8xbf16, #tpu.memory_space<vmem>>, vector<1x1x16x8xbf16>
    %63 = vector.shape_cast %62 : vector<1x1x16x8xbf16> to vector<16x8xbf16>
    %64 = vector.shape_cast %61 : vector<16x8xbf16> to vector<1x1x16x8xbf16>
    tpu.vector_store %arg5[%c0_44, %c3, %c0_45, %c0_46], %64 {strides = array<i32>} : memref<1x4x16x8xbf16, #tpu.memory_space<vmem>>, vector<1x1x16x8xbf16>,
    %65 = vector.extract_strided_slice %6 {offsets = [0, 56], sizes = [16, 8], strides = [1, 1]} : vector<16x96xf32> to vector<16x8xf32>
    %66 = arith.truncf %65 : vector<16x8xf32> to vector<16x8xbf16>
    %c0_47 = arith.constant 0 : index
    %c3_48 = arith.constant 3 : index
    %c0_49 = arith.constant 0 : index
    %c0_50 = arith.constant 0 : index
    %67 = vector.load %arg6[%c0_47, %c3_48, %c0_49, %c0_50] : memref<1x4x16x8xbf16, #tpu.memory_space<vmem>>, vector<1x1x16x8xbf16>
    %68 = vector.shape_cast %67 : vector<1x1x16x8xbf16> to vector<16x8xbf16>
    %69 = vector.shape_cast %66 : vector<16x8xbf16> to vector<1x1x16x8xbf16>
    tpu.vector_store %arg6[%c0_47, %c3_48, %c0_49, %c0_50], %69 {strides = array<i32>} : memref<1x4x16x8xbf16, #tpu.memory_space<vmem>>, vector<1x1x16x8xbf16>,
    %70 = vector.extract_strided_slice %6 {offsets = [0, 88], sizes = [16, 8], strides = [1, 1]} : vector<16x96xf32> to vector<16x8xf32>
    %71 = arith.truncf %70 : vector<16x8xf32> to vector<16x8xbf16>
    %c0_51 = arith.constant 0 : index
    %c3_52 = arith.constant 3 : index
    %c0_53 = arith.constant 0 : index
    %c0_54 = arith.constant 0 : index
    %72 = vector.load %arg7[%c0_51, %c3_52, %c0_53, %c0_54] : memref<1x4x16x8xbf16, #tpu.memory_space<vmem>>, vector<1x1x16x8xbf16>
    %73 = vector.shape_cast %72 : vector<1x1x16x8xbf16> to vector<16x8xbf16>
    %74 = vector.shape_cast %71 : vector<16x8xbf16> to vector<1x1x16x8xbf16>
    tpu.vector_store %arg7[%c0_51, %c3_52, %c0_53, %c0_54], %74 {strides = array<i32>} : memref<1x4x16x8xbf16, #tpu.memory_space<vmem>>, vector<1x1x16x8xbf16>,
    return
  }
  func.func @transform_0(%arg0: i32, %arg1: i32) -> (i32, i32, i32) {
    %c0_i32 = arith.constant 0 : i32
    %c0_i32_0 = arith.constant 0 : i32
    return %arg0, %arg1, %c0_i32 : i32, i32, i32
  }
  func.func @transform_1(%arg0: i32, %arg1: i32) -> (i32, i32) {
    %c0_i32 = arith.constant 0 : i32
    %c0_i32_0 = arith.constant 0 : i32
    %c0_i32_1 = arith.constant 0 : i32
    return %c0_i32, %c0_i32_0 : i32, i32
  }
  func.func @transform_2(%arg0: i32, %arg1: i32) -> (i32, i32) {
    %c0_i32 = arith.constant 0 : i32
    %c0_i32_0 = arith.constant 0 : i32
    %c0_i32_1 = arith.constant 0 : i32
    return %c0_i32, %c0_i32_0 : i32, i32
  }
  func.func @transform_3(%arg0: i32, %arg1: i32) -> (i32, i32, i32, i32) {
    %c0_i32 = arith.constant 0 : i32
    %c0_i32_0 = arith.constant 0 : i32
    %c0_i32_1 = arith.constant 0 : i32
    return %arg0, %c0_i32, %arg1, %c0_i32_0 : i32, i32, i32, i32
  }
  func.func @transform_4(%arg0: i32, %arg1: i32) -> (i32, i32, i32, i32) {
    %c0_i32 = arith.constant 0 : i32
    %c0_i32_0 = arith.constant 0 : i32
    %c0_i32_1 = arith.constant 0 : i32
    return %arg0, %c0_i32, %arg1, %c0_i32_0 : i32, i32, i32, i32
  }
  func.func @transform_5(%arg0: i32, %arg1: i32) -> (i32, i32, i32, i32) {
    %c0_i32 = arith.constant 0 : i32
    %c0_i32_0 = arith.constant 0 : i32
    %c0_i32_1 = arith.constant 0 : i32
    return %arg0, %c0_i32, %arg1, %c0_i32_0 : i32, i32, i32, i32
  }
}

</mosaic_0001>

<bundles_post_ra>
// kernel: tpu_custom_call.1
= control target key start
LH: loop header
LB: loop body
LE: loop exit
PB: predicated region body
PF: predicated region fallthrough
CT: control target
= control target key end

     0   :  { %s1475_s0 = inlined_call_operand.hbm [shape: bf16[2,32,32], index: 0, kind: input, shape index: {}]   ;;  %s1476_s1 = inlined_call_operand.hbm [shape: bf16[32,96], index: 1, kind: input, shape index: {}]   ;;  %s1477_s2 = inlined_call_operand.vmem [shape: f32[1,96], index: 2, kind: input, shape index: {}]   ;;  %s1478_s3 = inlined_call_operand.vmem [shape: bf16[2,4,32,8], index: 3, kind: output, shape index: {0}]   ;;  %s1479_s4 = inlined_call_operand.vmem [shape: bf16[2,4,32,8], index: 4, kind: output, shape index: {1}]   ;;  %s1480_s5 = inlined_call_operand.vmem [shape: bf16[2,4,32,8], index: 5, kind: output, shape index: {2}]  }
   0x1   :  { %1485 = sst [smem:[#allocation13_spill]] %s1476_s1 }
   0x2   :  { %1486 = sst [smem:[#allocation14_spill]] %s1478_s3 }
   0x3   :  { %1487 = sst [smem:[#allocation15_spill]] %s1479_s4 }
   0x4   :  { %1488 = sst [smem:[#allocation16_spill]] %s1480_s5 }
   0x5   :  { %11 = vsyncpa [#allocation3], 0 }
   0x6   :  { %13 = vsyncpa [#allocation3 + $0x1], 0 }
   0x7   :  { %14 = vsyncpa [#allocation5], 0  ;;  %s1223_s18 = smov 0   ;;  %s1225_s19 = smov 0  }
   0x8   :  { %s1227_s20 = smov 0   ;;  %s1229_s21 = smov 0  }
   0x9   :  { %s1231_s22 = smov 0   ;;  %s1233_s23 = smov 0  }
   0xa   :  { %s1235_s24 = smov 0   ;;  %s1237_s25 = smov 0  }
   0xb LB: > { %1489 = sst [smem:[#allocation11_spill]] %s1162_s22  ;;  %s879_s26 = sadd.s32 4294967295, %s1174_s25   ;;  %s1174_s25 = sphi %s1237_s25, %s20_s25   ;;  %s1170_s24 = sphi %s1235_s24, %s1515_s24   ;;  %s1166_s23 = sphi %s1233_s23, %s1514_s23   ;;  %s1162_s22 = sphi %s1231_s22, %s1513_s22   ;;  %s1158_s21 = sphi %s1229_s21, %s1512_s21   ;;  %s1154_s20 = sphi %s1227_s20, %s1511_s20   ;;  %s1150_s19 = sphi %s1225_s19, %s1510_s19   ;;  %s1146_s18 = sphi %s1223_s18, %s1509_s18  }
   0xc   : > { %p54_p0 = scmp.ne.s32.totalorder %s1150_s19, %s1146_s18  ;;  %p1263_p1 = scmp.eq.s32.totalorder %s879_s26, 0 }
   0xd   : > { %p1267_p2 = scmp.eq.s32.totalorder %s879_s26, 3  ;;  %p881_p3 = scmp.ge.s32.totalorder %s1174_s25, 1 }
   0xe   : > { %p191_p4 = scmp.lt.s32.totalorder %s1174_s25, 5  ;;  %p1275_p5 = por %p1263_p1, %p54_p0 }
   0xf   : > { %s1176_s6 = smov [#allocation4]  }
  0x10   : > { %s1492_s29 = scalar_select %p1275_p5, 1, 0 }
  0x11   : > { %p1279_p6 = pnand %p881_p3, %p191_p4  ;;  %s203_s7 = sshll.u32 %s1176_s6, 4  ;;  %s204_s7 = int_to_ptr.vmem [resolvable:$true] %s203_s7 }
  0x12   : > { %s1061_s8 = scalar_lea.vmem %s204_s7, 256  ;;  %p1069_p13 = scmp.lt.s32.totalorder %s204_s7, %s204_s7 }
  0x13   : > { %p956_p7 = pneg %p1279_p6  ;;  %p1062_p10 = scmp.ne.s32.totalorder %s204_s7, %s1061_s8 }
  0x14   : > { %p1070_p0 = scmp.lt.s32.totalorder %s1061_s8, %s1061_s8 }
  0x15   : > { %p957_p8 = pnand %p956_p7, %p1263_p1 }
  0x16   : > { %p1071_p5 = por %p1070_p0, %p1069_p13 }
  0x17   : > { %p1052_p9 = pneg %p957_p8 }
  0x19   : > { %p1064_p11 = pnand %p1062_p10, %p1052_p9 }
  0x1b   : > { %p1065_p12 = pneg %p1064_p11 }
  0x1d   : > { %p1072_p3 = pnand %p1071_p5, %p1065_p12 }
  0x1f   : > { %1075 = shalt.err (!%p1072_p3)
}
  0x20   : > { %s1482_s9 = smov 64   ;;  %s1483_s10 = smov 4  }
  0x21   : > { %s1494_s1 = sld [smem:[#allocation13_spill]]  ;;  %s29_s13 = sadd.s32 1, %s1166_s23 }
  0x22   : > { %s32_s14 = sadd.s32 1, %s1170_s24  ;;  %p30_p4 = scmp.ge.s32.totalorder %s29_s13, 2 }
  0x23   : > { %s41_s15 = sadd.s32 1, %s1154_s20  ;;  %p48_p5 = scmp.ne.s32.totalorder %s1154_s20, %s1150_s19 }
  0x24   : > { %p49_p7 = scmp.eq.s32.totalorder %s1174_s25, 0  ;;  %s1517_s13 = smov (%p30_p4, %s29_s13), 0 }
  0x25   : > { %1495 = sst [smem:[#allocation12_spill]] %s1517_s13  ;;  %s1519_s14 = smov (!%p30_p4, %s32_s14), %s1170_s24 }
  0x26   : > { %s37_s16 = ssub.s32 %s1166_s23, %s1517_s13  ;;  %p1304_p9 = por %p49_p7, %p48_p5 }
  0x27   : > { %959 = dma.hbm_to_vmem [thread:$0]  (!%p957_p8), %s1494_s1, 256, %s204_s7, [#allocation5], %s1482_s9, %s1482_s9, %s1483_s10  }
  0x28   : > { %p34_p8 = scmp.ge.s32.totalorder %s1519_s14, 2  ;;  %p1310_p10 = por %p1267_p2, %p48_p5 }
  0x29   : > { %p965_p11 = scmp.lt.s32.totalorder %s1174_s25, 4  ;;  %s220_s26 = sand.u32 1, %s1154_s20  }
  0x2a   : > { %s1521_s14 = smov (%p34_p8, %s1519_s14), 0  ;;  %s884_s6 = sshll.u32 %s220_s26, 3 }
  0x2b   : > { %s36_s7 = ssub.s32 %s1170_s24, %s1521_s14  ;;  %s885_s11 = sshll.u32 %s1166_s23, 1 }
  0x2c   : > { %s38_s8 = sor.u32 %s37_s16, %s36_s7  ;;  %s886_s12 = sshll.u32 %s1170_s24, 2 }
  0x2d   : > { %p39_p12 = scmp.eq.s32.totalorder %s38_s8, 0  ;;  %s230_s9 = sadd.s32 %s886_s12, %s885_s11 }
  0x2e   : > { %s224_s10 = scalar_lea.vmem [#allocation2], %s884_s6  ;;  %s887_s13 = sshll.u32 %s230_s9, 6 }
  0x2f   : > { %s233_s28 = sshll.u32 %s224_s10, 4  ;;  %s232_s3 = scalar_lea.hbm %s1475_s0, %s887_s13  ;;  %s234_s28 = int_to_ptr.vmem [resolvable:$true] %s233_s28 }
  0x30   : > { %s1323_s1 = scalar_select %p39_p12, %s1154_s20, %s41_s15  }
  0x31   : > { %p1332_p2 = pnand %p965_p11, %p1304_p9  ;;  %s221_s16 = scalar_lea.sflag [#allocation3], %s220_s26 }
  0x32   : > { %s1089_s6 = scalar_lea.vmem %s234_s28, 128  ;;  %s1179_s9 = smov [#allocation2]  }
  0x33   : > { %p1078_p13 = pneg %p1332_p2  ;;  %p1090_p0 = scmp.ne.s32.totalorder %s234_s28, %s1089_s6 }
  0x34   : > { %s1094_s10 = sshll.u32 %s1179_s9, 4  ;;  %s1095_s10 = int_to_ptr.vmem [resolvable:$false] %s1094_s10 }
  0x35   : > { %p1092_p3 = pnand %p1090_p0, %p1078_p13  ;;  %s1096_s15 = scalar_lea.vmem %s1095_s10, 256 }
  0x36   : > { %p1097_p5 = scmp.lt.s32.totalorder %s234_s28, %s1095_s10  ;;  %p1098_p7 = scmp.lt.s32.totalorder %s1096_s15, %s1089_s6 }
  0x37   : > { %p1093_p4 = pneg %p1092_p3 }
  0x38   : > { %p1099_p8 = por %p1098_p7, %p1097_p5 }
  0x3a   : > { %p1100_p12 = pnand %p1099_p8, %p1093_p4 }
  0x3c   : > { %1103 = shalt.err (!%p1100_p12)
}
  0x3d   : > { %s1499_s4 = smov 4   ;;  %s1500_s5 = smov 64  }
  0x3e   : > { %963 = dma.hbm_to_vmem [thread:$0]  (!%p1332_p2), %s232_s3, 128, %s234_s28, %s221_s16, %s1500_s5, %s1500_s5, %s1499_s4  }
  0x3f   : > { %245 = sbr.rel (%p1279_p6) target bundleno = 461 (0x1cd), region = 32  ;;  %s247_s13 = sand.u32 (!%p1279_p6), 1, %s1150_s19  }
  0x40   : > { %s889_s17 = sshll.u32 (!%p1279_p6), %s247_s13, 3  ;;  %s248_s26 = scalar_lea.sflag (!%p1279_p6), [#allocation3], %s247_s13 }
  0x41   : > { %s251_s7 = scalar_lea.vmem (!%p1279_p6), [#allocation2], %s889_s17  ;;  %p1501_p9 = scmp.ne.s32.totalorder (!%p1279_p6), %s1492_s29, 0 }
  0x44   : > { %1137 = dma.done.wait (%p1501_p9), %s248_s26, 128  }
  0x45   : > { %1139 = vsyncadd (%p1501_p9), %s248_s26, 4294967168 }
  0x46   : > { %1141 = dma.done.wait (%p1263_p1), [#allocation5], 256  }
  0x47   : > { %1143 = vsyncadd (%p1263_p1), [#allocation5], 4294967040  ;;  %v1180_v0 = vmov 0.0   ;;  %vm1181_vm0 = vmmov 0   ;;  %v1047_v1 = vld [vmem:[#allocation4 + $0x8] sm:$0xff]   ;;  %v1048_v2 = vld [vmem:[#allocation4] sm:$0xff]  }
  0x48   : > { %942 = vmatprep.subr.bf16.mxu0 %v1180_v0  ;;  %946 = vmatprep.mubr.msk.bf16.mxu0 %vm1181_vm0, %v1180_v0  ;;  %v1049_v3 = vld [vmem:[%s251_s7] sm:$0xff]   ;;  %vm324_vm1 = vcmask 261120   ;;  %s1357_s29 = sshll.u32 %s247_s13, 5  ;;  %vm379_vm2 = vcmask 60416   ;;  %s1182_s27 = smov 64  }
  0x49   : > { %943 = vmatpush3.bf16.msra.mxu0 %v1047_v1  ;;  %v894_v4 = vld [vmem:[%s1477_s2] ss:$0 sm:$0xff]  ;;  %s1183_s30 = smov 96   ;;  %s1361_s8 = scalar_lea.vmem [#allocation6], %s1357_s29 }
  0x4a   : > { %944 = vmatprep.subr.bf16.mxu0 %v1180_v0  ;;  %s1184_s11 = smov 88   ;;  %s1185_s12 = smov 56  }
  0x4b   : > { %s1186_s28 = smov 80   ;;  %s1187_s16 = smov 48  }
  0x4c   : > { %s1188_s6 = smov 72   ;;  %s1189_s9 = smov 120  }
  0x4d   : > { %945 = vmatpush3.bf16.msra.mxu0 %v1048_v2  ;;  %s1190_s10 = smov 112   ;;  %s1191_s15 = smov 104  }
  0x4e   : > { %s1192_s4 = smov 40   ;;  %s1369_s5 = scalar_lea.vmem [#allocation8], %s1357_s29 }
  0x4f   : > { %s1374_s13 = scalar_lea.vmem [#allocation7], %s1357_s29  ;;  %s1502_s17 = sld [smem:[#allocation11_spill]] (%p1310_p10) }
  0x50   : > { %947 = vmatmul.mubr.msk.bf16.vlgmr.msra.gmra.mxu0 %vm324_vm1, %v1049_v3  ;;  %s924_s26 = sshll.u32 (%p1310_p10), %s1158_s21, 1 }
  0x55   : > { %s925_s7 = sshll.u32 (%p1310_p10), %s1502_s17, 4 }
  0x56   : > { %s502_s3 = sadd.s32 (%p1310_p10), %s925_s7, %s924_s26 }
  0x57   : > { %s926_s22 = sshll.u32 (%p1310_p10), %s502_s3, 2 }
 0x110   : > { %v362_v5 = vpop.f32.mrf.mxu0 }
 0x111   : > { %v363_v6 = vadd.f32 %v894_v4, %v362_v5 }
 0x112   : > { %v948_v7 = vpop.f32.mrf.mxu0 }
 0x113   : > { %v369_v8 = vmul.f32 0.35355338, %v363_v6  ;;  %v937_v9 = vpack.c.bf16 %v363_v6, %v363_v6 }
 0x114   : > { %v365_v10 = vpop.f32.mrf.mxu0 }
 0x115   : > { %v935_v11 = vpack.c.bf16 %v369_v8, %v369_v8  ;;  %v366_v12 = vadd.f32 %v894_v4, %v365_v10  ;;  %396 = vrot.lane.b32.xlu1 %v937_v9, %s1182_s27  ;;  %388 = vrot.lane.b32.xlu0 %v937_v9, %s1183_s30 }
 0x116   : > { %v949_v13 = vpop.f32.mrf.mxu0 }
 0x117   : > { %380 = vst.msk [vmem:[%s1361_s8] sm:$0xf] %vm379_vm2, %v935_v11  ;;  %v370_v14 = vmul.f32 0.35355338, %v366_v12  ;;  %v938_v15 = vpack.c.bf16 %v366_v12, %v366_v12 }
 0x119   : > { %v936_v16 = vpack.c.bf16 %v370_v14, %v370_v14  ;;  %413 = vrot.lane.b32.xlu0 %v937_v9, %s1184_s11  ;;  %398 = vrot.lane.b32.xlu1 %v938_v15, %s1182_s27 }
 0x11b   : > { %381 = vst.msk [vmem:[%s1361_s8 + $0x4] sm:$0xf] %vm379_vm2, %v936_v16 }
 0x11d   : > { %422 = vrot.lane.b32.xlu0 %v937_v9, %s1185_s12  ;;  %415 = vrot.lane.b32.xlu1 %v938_v15, %s1184_s11 }
 0x121   : > { %440 = vrot.lane.b32.xlu0 %v937_v9, %s1186_s28  ;;  %424 = vrot.lane.b32.xlu1 %v938_v15, %s1185_s12 }
 0x122   : > { %v521_v39 = vld [vmem:[%s1361_s8] sm:$0xff] (%p1310_p10)  }
 0x125   : > { %449 = vrot.lane.b32.xlu0 %v937_v9, %s1187_s16  ;;  %442 = vrot.lane.b32.xlu1 %v938_v15, %s1186_s28 }
 0x129   : > { %467 = vrot.lane.b32.xlu0 %v937_v9, %s1188_s6  ;;  %451 = vrot.lane.b32.xlu1 %v938_v15, %s1187_s16 }
 0x12d   : > { %404 = vrot.lane.b32.xlu0 %v935_v11, %s1189_s9  ;;  %469 = vrot.lane.b32.xlu1 %v938_v15, %s1188_s6 }
 0x131   : > { %431 = vrot.lane.b32.xlu0 %v935_v11, %s1190_s10  ;;  %406 = vrot.lane.b32.xlu1 %v936_v16, %s1189_s9 }
 0x135   : > { %458 = vrot.lane.b32.xlu0 %v935_v11, %s1191_s15  ;;  %433 = vrot.lane.b32.xlu1 %v936_v16, %s1190_s10 }
 0x139   : > { %390 = vrot.lane.b32.xlu0 %v938_v15, %s1183_s30  ;;  %460 = vrot.lane.b32.xlu1 %v936_v16, %s1191_s15  ;;  %s1503_s30 = sld [smem:[#allocation14_spill]] (%p1310_p10) }
 0x13d   : > { %476 = vrot.lane.b32.xlu0 %v937_v9, %s1192_s4  ;;  %478 = vrot.lane.b32.xlu1 %v938_v15, %s1192_s4 }
 0x13f   : > { %s504_s11 = scalar_lea.vmem (%p1310_p10), %s1503_s30, %s926_s22 }
 0x140   : > { %522 = vst [vmem:[%s504_s11] sm:$0xff] (%p1310_p10), %v521_v39  }
 0x187   : > { %v397_v17 = vpop.permute.xlu1 %396  ;;  %v389_v18 = vpop.permute.xlu0 %388 }
 0x188   : > { %402 = vst.msk [vmem:[%s1369_s5] sm:$0xf] %vm379_vm2, %v397_v17  ;;  %394 = vst.msk [vmem:[%s1374_s13] sm:$0xf] %vm379_vm2, %v389_v18 }
 0x18b   : > { %v414_v19 = vpop.permute.xlu0 %413  ;;  %v399_v20 = vpop.permute.xlu1 %398 }
 0x18c   : > { %905 = vst.msk [vmem:[%s1374_s13 + $0x8] sm:$0xf] %vm379_vm2, %v414_v19  ;;  %403 = vst.msk [vmem:[%s1369_s5 + $0x4] sm:$0xf] %vm379_vm2, %v399_v20 }
 0x18f   : > { %v423_v21 = vpop.permute.xlu0 %422  ;;  %v416_v22 = vpop.permute.xlu1 %415 }
 0x190   : > { %907 = vst.msk [vmem:[%s1369_s5 + $0x8] sm:$0xf] %vm379_vm2, %v423_v21  ;;  %906 = vst.msk [vmem:[%s1374_s13 + $0xc] sm:$0xf] %vm379_vm2, %v416_v22 }
 0x193   : > { %v441_v23 = vpop.permute.xlu0 %440  ;;  %v425_v24 = vpop.permute.xlu1 %424 }
 0x194   : > { %911 = vst.msk [vmem:[%s1374_s13 + $0x10] sm:$0xf] %vm379_vm2, %v441_v23  ;;  %908 = vst.msk [vmem:[%s1369_s5 + $0xc] sm:$0xf] %vm379_vm2, %v425_v24 }
 0x197   : > { %v450_v25 = vpop.permute.xlu0 %449  ;;  %v443_v26 = vpop.permute.xlu1 %442 }
 0x198   : > { %913 = vst.msk [vmem:[%s1369_s5 + $0x10] sm:$0xf] %vm379_vm2, %v450_v25  ;;  %912 = vst.msk [vmem:[%s1374_s13 + $0x14] sm:$0xf] %vm379_vm2, %v443_v26 }
 0x19b   : > { %v468_v27 = vpop.permute.xlu0 %467  ;;  %v452_v28 = vpop.permute.xlu1 %451 }
 0x19c   : > { %917 = vst.msk [vmem:[%s1374_s13 + $0x18] sm:$0xf] %vm379_vm2, %v468_v27  ;;  %914 = vst.msk [vmem:[%s1369_s5 + $0x14] sm:$0xf] %vm379_vm2, %v452_v28 }
 0x19f   : > { %v405_v29 = vpop.permute.xlu0 %404  ;;  %v470_v30 = vpop.permute.xlu1 %469 }
 0x1a0   : > { %903 = vst.msk [vmem:[%s1361_s8 + $0x8] sm:$0xf] %vm379_vm2, %v405_v29  ;;  %918 = vst.msk [vmem:[%s1374_s13 + $0x1c] sm:$0xf] %vm379_vm2, %v470_v30 }
 0x1a3   : > { %v432_v31 = vpop.permute.xlu0 %431  ;;  %v407_v32 = vpop.permute.xlu1 %406 }
 0x1a4   : > { %909 = vst.msk [vmem:[%s1361_s8 + $0x10] sm:$0xf] %vm379_vm2, %v432_v31  ;;  %904 = vst.msk [vmem:[%s1361_s8 + $0xc] sm:$0xf] %vm379_vm2, %v407_v32 }
 0x1a7   : > { %v459_v33 = vpop.permute.xlu0 %458  ;;  %v434_v34 = vpop.permute.xlu1 %433 }
 0x1a8   : > { %915 = vst.msk [vmem:[%s1361_s8 + $0x18] sm:$0xf] %vm379_vm2, %v459_v33  ;;  %910 = vst.msk [vmem:[%s1361_s8 + $0x14] sm:$0xf] %vm379_vm2, %v434_v34 }
 0x1ab   : > { %v391_v35 = vpop.permute.xlu0 %390  ;;  %v461_v36 = vpop.permute.xlu1 %460  ;;  %v525_v40 = vld [vmem:[%s1361_s8 + $0x8] sm:$0xff] (%p1310_p10)  }
 0x1ac   : > { %395 = vst.msk [vmem:[%s1374_s13 + $0x4] sm:$0xf] %vm379_vm2, %v391_v35  ;;  %916 = vst.msk [vmem:[%s1361_s8 + $0x1c] sm:$0xf] %vm379_vm2, %v461_v36  ;;  %499 = sbr.rel (!%p1310_p10) target bundleno = 437 (0x1b5), region = 44 }
 0x1ad   : > { %526 = vst [vmem:[%s504_s11 + $0x10] sm:$0xff] (%p1310_p10), %v525_v40  }
 0x1af   : > { %v477_v37 = vpop.permute.xlu0 %476  ;;  %v479_v38 = vpop.permute.xlu1 %478  ;;  %v529_v41 = vld [vmem:[%s1361_s8 + $0x10] sm:$0xff] (%p1310_p10)  }
 0x1b0   : > { %919 = vst.msk [vmem:[%s1369_s5 + $0x18] sm:$0xf] %vm379_vm2, %v477_v37  ;;  %920 = vst.msk [vmem:[%s1369_s5 + $0x1c] sm:$0xf] %vm379_vm2, %v479_v38 }
 0x1b1   : > { %530 = vst [vmem:[%s504_s11 + $0x20] sm:$0xff] %v529_v41  }
 0x1b3   : > { %v533_v42 = vld [vmem:[%s1361_s8 + $0x18] sm:$0xff]  }
 0x1b4   : > { %534 = vst [vmem:[%s504_s11 + $0x30] sm:$0xff] %v533_v42  }
 0x1b5 PF: > { %576 = sbr.rel (!%p1310_p10) target bundleno = 449 (0x1c1), region = 85  ;;  %s1504_s12 = sld [smem:[#allocation11_spill]] (%p1310_p10)  ;;  %v602_v44 = vld [vmem:[%s1374_s13 + $0x8] sm:$0xff] (%p1310_p10)   ;;  %v606_v45 = vld [vmem:[%s1374_s13 + $0x10] sm:$0xff] (%p1310_p10)   ;;  %v610_v46 = vld [vmem:[%s1374_s13 + $0x18] sm:$0xff] (%p1310_p10)  }
 0x1b6   : > { %s927_s8 = sshll.u32 (%p1310_p10), %s1158_s21, 1  ;;  %s1505_s15 = sld [smem:[#allocation15_spill]] (%p1310_p10) }
 0x1b7   : > { %v598_v43 = vld [vmem:[%s1374_s13] sm:$0xff] (%p1310_p10)  }
 0x1bb   : > { %s928_s28 = sshll.u32 %s1504_s12, 4 }
 0x1bc   : > { %s579_s16 = sadd.s32 %s928_s28, %s927_s8 }
 0x1bd   : > { %s929_s6 = sshll.u32 %s579_s16, 2 }
 0x1be   : > { %s581_s4 = scalar_lea.vmem %s1505_s15, %s929_s6 }
 0x1bf   : > { %599 = vst [vmem:[%s581_s4] sm:$0xff] %v598_v43   ;;  %603 = vst [vmem:[%s581_s4 + $0x10] sm:$0xff] %v602_v44  }
 0x1c0   : > { %607 = vst [vmem:[%s581_s4 + $0x20] sm:$0xff] %v606_v45   ;;  %611 = vst [vmem:[%s581_s4 + $0x30] sm:$0xff] %v610_v46  }
 0x1c1 PF: > { %653 = sbr.rel (!%p1310_p10) target bundleno = 461 (0x1cd), region = 126  ;;  %s1506_s17 = sld [smem:[#allocation11_spill]] (%p1310_p10)  ;;  %v675_v47 = vld [vmem:[%s1369_s5] sm:$0xff] (%p1310_p10)   ;;  %v679_v48 = vld [vmem:[%s1369_s5 + $0x8] sm:$0xff] (%p1310_p10)   ;;  %v683_v49 = vld [vmem:[%s1369_s5 + $0x10] sm:$0xff] (%p1310_p10)  }
 0x1c2   : > { %s930_s13 = sshll.u32 (%p1310_p10), %s1158_s21, 1  ;;  %v687_v50 = vld [vmem:[%s1369_s5 + $0x18] sm:$0xff] (%p1310_p10)   ;;  %s1507_s27 = sld [smem:[#allocation16_spill]] (%p1310_p10) }
 0x1c7   : > { %s931_s26 = sshll.u32 %s1506_s17, 4 }
 0x1c8   : > { %s656_s7 = sadd.s32 %s931_s26, %s930_s13 }
 0x1c9   : > { %s932_s3 = sshll.u32 %s656_s7, 2 }
 0x1ca   : > { %s658_s30 = scalar_lea.vmem %s1507_s27, %s932_s3 }
 0x1cb   : > { %676 = vst [vmem:[%s658_s30] sm:$0xff] %v675_v47   ;;  %680 = vst [vmem:[%s658_s30 + $0x10] sm:$0xff] %v679_v48  }
 0x1cc   : > { %684 = vst [vmem:[%s658_s30 + $0x20] sm:$0xff] %v683_v49   ;;  %688 = vst [vmem:[%s658_s30 + $0x30] sm:$0xff] %v687_v50  }
 0x1cd PF: > { %s20_s25 = sadd.s32 1, %s1174_s25   ;;  %s1508_s5 = sld [smem:[#allocation12_spill]] }
 0x1ce   : > { %p17_p1 = scmp.ge.s32.totalorder %s20_s25, 6   ;;  %s1509_s18 = smov %s1150_s19 }
 0x1cf   : > { %s1510_s19 = smov %s1154_s20  ;;  %s1511_s20 = smov %s1323_s1 }
 0x1d0   : > { %s1512_s21 = smov %s1166_s23  ;;  %s1513_s22 = smov %s1170_s24 }
 0x1d1   : > { %s1515_s24 = smov %s1521_s14  ;;  %19 = sbr.rel (!%p17_p1) target bundleno = 11 (0xb), region = 232 }
 0x1d3   : > { %s1514_s23 = smov %s1508_s5 }
 0x1d6   :  { %754 = vsyncpa [#allocation3], 1 }
 0x1d7   :  { %756 = vsyncpa [#allocation3 + $0x1], 1 }
 0x1d8   :  { %757 = vsyncpa [#allocation5], 1 }

</bundles_post_ra>
